<compile_context>
chip_gen: v5e
topology: v5e:2x2
jax: 0.10.0
libtpu: 0.0.40
codegen_flags: <defaults>
</compile_context>

<pallas_src>
import functools

import jax
import jax.numpy as jnp
from jax import lax
from jax.experimental import pallas as pl
from jax.experimental.pallas import tpu as pltpu


def _round_up(x: int, m: int) -> int:
    return ((x + m - 1) // m) * m


def action_net_kernel(x_ref, mask_ref, w1_ref, b1_ref, w2_ref, b2_ref, out_ref):
    # x_ref:    (TN, F)  row-tile of encoded features (rows on sublanes)
    # mask_ref: (1, TN)  action-candidate mask, lane-dense
    # w1_ref:   (H, F)   first Linear weight (torch (out, in) layout), resident
    # b1_ref:   (H, 1)   first Linear bias as a column, resident
    # w2_ref:   (H, 1)   final Linear weight as a column, resident
    # b2_ref:   (1, 1)   final Linear bias, SMEM scalar
    # out_ref:  (1, TN)  lane-dense scores for this row-tile
    mask = mask_ref[...]                                  # (1, TN)

    # h[j, r] = sum_f W1[j, f] * x[r, f]  -> (H, TN).
    # Contraction over the last dim of both operands keeps the MXU output
    # lane-dense in the row dimension TN.
    h = lax.dot_general(
        w1_ref[...], x_ref[...],
        dimension_numbers=(((1,), (1,)), ((), ())),
        preferred_element_type=jnp.float32,
    )
    h = jnp.maximum(h + b1_ref[...], 0.0)                 # Linear bias + ReLU
    h = h * mask                                          # torch: * mask.unsqueeze(-1)

    # Linear(hidden -> 1): VPU multiply + sublane (XLU) reduce instead of a
    # width-1 MXU matmul; b2 is a scalar broadcast from SMEM.
    s = jnp.sum(h * w2_ref[...], axis=0, keepdims=True) + b2_ref[0, 0]
    out_ref[...] = s * mask                               # final mask, matches torch


@functools.partial(jax.jit, static_argnames=("row_tile", "compute_dtype"))
def action_net_forward(inputs, mask, w1, b1, w2, b2, *,
                       row_tile=2048, compute_dtype=jnp.float32):
    """ActionNet forward.

    inputs: (B, A, F) float32 encoded features, F = hidden * num_inputs
    mask:   (B, A)   float32 action mask
    w1: (H, F), b1: (H,), w2: (1, H), b2: (1,)  — torch nn.Linear layouts.
    Returns (B, A) float32 scores.
    """
    B, A, F = inputs.shape
    H = w1.shape[0]
    N = B * A

    # Lane-dense layout: rows live on the lane axis of mask/output, so pad N up
    # to a 128-aligned row tile.
    tn = min(_round_up(row_tile, 128), _round_up(max(N, 1), 128))
    n_pad = _round_up(N, tn)

    x2d = inputs.reshape(N, F).astype(compute_dtype)
    m_row = mask.reshape(1, N).astype(jnp.float32)
    if n_pad != N:
        x2d = jnp.pad(x2d, ((0, n_pad - N), (0, 0)))
        m_row = jnp.pad(m_row, ((0, 0), (0, n_pad - N)))

    w1c = w1.astype(compute_dtype)                # (H, F) torch layout
    b1c = b1.reshape(H, 1).astype(jnp.float32)    # column for lane-broadcast
    w2c = w2.reshape(H, 1).astype(jnp.float32)    # (1, H) -> (H, 1) column
    b2c = b2.reshape(1, 1).astype(jnp.float32)    # SMEM scalar

    grid = (n_pad // tn,)

    out = pl.pallas_call(
        action_net_kernel,
        out_shape=jax.ShapeDtypeStruct((1, n_pad), jnp.float32),
        grid=grid,
        in_specs=[
            pl.BlockSpec((tn, F), lambda i: (i, 0)),            # x row-tile (pipelined)
            pl.BlockSpec((1, tn), lambda i: (0, i)),            # mask, lane-dense
            pl.BlockSpec((H, F), lambda i: (0, 0)),             # W1 resident
            pl.BlockSpec((H, 1), lambda i: (0, 0)),             # b1 resident
            pl.BlockSpec((H, 1), lambda i: (0, 0)),             # W2 resident
            pl.BlockSpec(memory_space=pltpu.MemorySpace.SMEM),  # b2 scalar
        ],
        out_specs=pl.BlockSpec((1, tn), lambda i: (0, i)),      # lane-dense scores
        compiler_params=pltpu.CompilerParams(
            dimension_semantics=("parallel",),                  # shard rows across TCs
        ),
    )(x2d, m_row, w1c, b1c, w2c, b2c)

    return out[0, :N].reshape(B, A)


def reference_action_net(inputs, mask, w1, b1, w2, b2):
    """Pure-JAX reference mirroring torch ActionNet.forward (torch weight layouts)."""
    h = jnp.maximum(
        jnp.einsum("baf,hf->bah", inputs, w1, precision=lax.Precision.HIGHEST) + b1,
        0.0)
    h = h * mask[..., None]
    s = jnp.einsum("bah,oh->bao", h, w2, precision=lax.Precision.HIGHEST) + b2
    return s[..., 0] * mask


if __name__ == "__main__":
    # Shapes implied by PolicyNet: action_net_hidden_size = 32,
    # num_inputs = 2 (actions + observations).
    batch = 2
    num_actions = 8
    hidden = 32
    num_inputs = 2
    feat = hidden * num_inputs  # 64

    key = jax.random.PRNGKey(0)
    k_x, k_w1, k_b1, k_w2, k_b2, k_m = jax.random.split(key, 6)

    # torch nn.Linear default init: U(-1/sqrt(fan_in), 1/sqrt(fan_in)),
    # weights stored as (out_features, in_features).
    bound1 = 1.0 / jnp.sqrt(jnp.float32(feat))
    w1 = jax.random.uniform(k_w1, (hidden, feat), jnp.float32, -bound1, bound1)
    b1 = jax.random.uniform(k_b1, (hidden,), jnp.float32, -bound1, bound1)
    bound2 = 1.0 / jnp.sqrt(jnp.float32(hidden))
    w2 = jax.random.uniform(k_w2, (1, hidden), jnp.float32, -bound2, bound2)
    b2 = jax.random.uniform(k_b2, (1,), jnp.float32, -bound2, bound2)

    # TODO(synk): the encode() path (TextEncoder / LTL / graph encoder / LSTM
    # memory / vocabularies) is external-module glue with no Pallas equivalent;
    # its output is modeled by this synthetic `inputs` tensor.
    inputs = jax.random.normal(k_x, (batch, num_actions, feat), jnp.float32)
    mask = (jax.random.uniform(k_m, (batch, num_actions)) > 0.3).astype(jnp.float32)

    out = action_net_forward(inputs, mask, w1, b1, w2, b2)
    out = jax.block_until_ready(out)

    ref = reference_action_net(inputs, mask, w1, b1, w2, b2)
    assert out.shape == (batch, num_actions)
    assert jnp.allclose(out, ref, atol=1e-5, rtol=1e-5), float(jnp.max(jnp.abs(out - ref)))

    print("KERNEL_OK")
</pallas_src>

<mosaic_0001>
module attributes {stable_mosaic.version = 11 : i64} {
  func.func @action_net_kernel(%arg0: i32, %arg1: memref<128x64xf32, #tpu.memory_space<vmem>>, %arg2: memref<1x128xf32, #tpu.memory_space<vmem>>, %arg3: memref<32x64xf32, #tpu.memory_space<vmem>>, %arg4: memref<32x1xf32, #tpu.memory_space<vmem>>, %arg5: memref<32x1xf32, #tpu.memory_space<vmem>>, %arg6: memref<1x1xf32, #tpu.memory_space<smem>>, %arg7: memref<1x128xf32, #tpu.memory_space<vmem>>) attributes {dimension_semantics = [#tpu.dimension_semantics<parallel>], iteration_bounds = array<i64: 1>, scalar_prefetch = 0 : i64, scratch_operands = 0 : i64, tpu.core_type = #tpu.core_type<tc>, window_params = [{transform_indices = @transform_0, window_bounds = array<i64: 128, 64>}, {transform_indices = @transform_1, window_bounds = array<i64: 1, 128>}, {pipeline_mode = #tpu.pipeline_mode<synchronous>, transform_indices = @transform_2, window_bounds = array<i64: 32, 64>}, {pipeline_mode = #tpu.pipeline_mode<synchronous>, transform_indices = @transform_3, window_bounds = array<i64: 32, 1>}, {pipeline_mode = #tpu.pipeline_mode<synchronous>, transform_indices = @transform_4, window_bounds = array<i64: 32, 1>}, {transform_indices = @transform_5, window_bounds = array<i64: 1, 1>}, {transform_indices = @transform_6, window_bounds = array<i64: 1, 128>}]} {
    %c0 = arith.constant 0 : index
    %c0_0 = arith.constant 0 : index
    %0 = vector.load %arg2[%c0, %c0_0] : memref<1x128xf32, #tpu.memory_space<vmem>>, vector<1x128xf32>
    %c0_1 = arith.constant 0 : index
    %c0_2 = arith.constant 0 : index
    %1 = vector.load %arg3[%c0_1, %c0_2] : memref<32x64xf32, #tpu.memory_space<vmem>>, vector<32x64xf32>
    %c0_3 = arith.constant 0 : index
    %c0_4 = arith.constant 0 : index
    %2 = vector.load %arg1[%c0_3, %c0_4] : memref<128x64xf32, #tpu.memory_space<vmem>>, vector<128x64xf32>
    %cst = arith.constant dense<0.000000e+00> : vector<32x128xf32>
    %3 = tpu.matmul %1, %2, %cst {dimension_numbers = #tpu.dot_dimension_numbers<[1], [1], [0], [0], [0, 0, 1, 0], [], []>} : vector<32x64xf32>, vector<128x64xf32>, vector<32x128xf32> -> vector<32x128xf32>
    %c0_5 = arith.constant 0 : index
    %c0_6 = arith.constant 0 : index
    %4 = vector.load %arg4[%c0_5, %c0_6] : memref<32x1xf32, #tpu.memory_space<vmem>>, vector<32x1xf32>
    %5 = vector.broadcast %4 : vector<32x1xf32> to vector<32x128xf32>
    %6 = arith.addf %3, %5 : vector<32x128xf32>
    %cst_7 = arith.constant 0.000000e+00 : f32
    %7 = vector.broadcast %cst_7 : f32 to vector<32x128xf32>
    %8 = arith.maximumf %6, %7 : vector<32x128xf32>
    %9 = vector.broadcast %0 : vector<1x128xf32> to vector<32x128xf32>
    %10 = arith.mulf %8, %9 : vector<32x128xf32>
    %c0_8 = arith.constant 0 : index
    %c0_9 = arith.constant 0 : index
    %11 = vector.load %arg5[%c0_8, %c0_9] : memref<32x1xf32, #tpu.memory_space<vmem>>, vector<32x1xf32>
    %12 = vector.broadcast %11 : vector<32x1xf32> to vector<32x128xf32>
    %13 = arith.mulf %10, %12 : vector<32x128xf32>
    %cst_10 = arith.constant dense<0.000000e+00> : vector<128xf32>
    %14 = vector.multi_reduction <add>, %13, %cst_10 [0] : vector<32x128xf32> to vector<128xf32>
    %15 = vector.shape_cast %14 : vector<128xf32> to vector<1x128xf32>
    %c0_11 = arith.constant 0 : index
    %c0_12 = arith.constant 0 : index
    %16 = memref.load %arg6[%c0_11, %c0_12] : memref<1x1xf32, #tpu.memory_space<smem>>
    %17 = vector.broadcast %16 : f32 to vector<1x128xf32>
    %18 = arith.addf %15, %17 : vector<1x128xf32>
    %19 = arith.mulf %18, %0 : vector<1x128xf32>
    %c0_13 = arith.constant 0 : index
    %c0_14 = arith.constant 0 : index
    %20 = vector.load %arg7[%c0_13, %c0_14] : memref<1x128xf32, #tpu.memory_space<vmem>>, vector<1x128xf32>
    tpu.vector_store %arg7[%c0_13, %c0_14], %19 {strides = array<i32>} : memref<1x128xf32, #tpu.memory_space<vmem>>, vector<1x128xf32>,
    return
  }
  func.func @transform_0(%arg0: i32) -> (i32, i32) {
    %c0_i32 = arith.constant 0 : i32
    %c0_i32_0 = arith.constant 0 : i32
    return %arg0, %c0_i32 : i32, i32
  }
  func.func @transform_1(%arg0: i32) -> (i32, i32) {
    %c0_i32 = arith.constant 0 : i32
    %c0_i32_0 = arith.constant 0 : i32
    return %c0_i32, %arg0 : i32, i32
  }
  func.func @transform_2(%arg0: i32) -> (i32, i32) {
    %c0_i32 = arith.constant 0 : i32
    %c0_i32_0 = arith.constant 0 : i32
    %c0_i32_1 = arith.constant 0 : i32
    return %c0_i32, %c0_i32_0 : i32, i32
  }
  func.func @transform_3(%arg0: i32) -> (i32, i32) {
    %c0_i32 = arith.constant 0 : i32
    %c0_i32_0 = arith.constant 0 : i32
    %c0_i32_1 = arith.constant 0 : i32
    return %c0_i32, %c0_i32_0 : i32, i32
  }
  func.func @transform_4(%arg0: i32) -> (i32, i32) {
    %c0_i32 = arith.constant 0 : i32
    %c0_i32_0 = arith.constant 0 : i32
    %c0_i32_1 = arith.constant 0 : i32
    return %c0_i32, %c0_i32_0 : i32, i32
  }
  func.func @transform_5(%arg0: i32) -> (i32, i32) {
    %c0_i32 = arith.constant 0 : i32
    %c0_i32_0 = arith.constant 0 : i32
    %c0_i32_1 = arith.constant 0 : i32
    return %c0_i32, %c0_i32_0 : i32, i32
  }
  func.func @transform_6(%arg0: i32) -> (i32, i32) {
    %c0_i32 = arith.constant 0 : i32
    %c0_i32_0 = arith.constant 0 : i32
    return %c0_i32, %arg0 : i32, i32
  }
}

</mosaic_0001>

<bundles_post_ra>
// kernel: squeeze.1
= control target key start
LH: loop header
LB: loop body
LE: loop exit
PB: predicated region body
PF: predicated region fallthrough
CT: control target
= control target key end

     0   :  { %s80_s0 = inlined_call_operand.vmem [shape: f32[16], index: 0, kind: input, shape index: {}]   ;;  %s81_s1 = inlined_call_operand.hbm [shape: f32[2,8], index: 1, kind: output, shape index: {}]  }
   0x1   :  { %v5_v0 = vld [vmem:[%s80_s0] sm:$0x1] }
   0x2   :  { %2 = vsyncpa [#allocation1], 0  ;;  %6 = vst [vmem:[#allocation3] sm:$0x1] %v5_v0  ;;  %vm8_vm0 = vcmask 64512   ;;  %s62_s0 = smov 120  }
   0x3   :  { %s63_s8 = smov [#allocation0]   ;;  %s27_s1 = sshll.u32 %s81_s1, 4  ;;  %s28_s1 = int_to_ptr.hbm [resolvable:$true] %s27_s1 }
   0x4   :  { %s25_s9 = sshll.u32 %s63_s8, 4  ;;  %s26_s9 = int_to_ptr.vmem [resolvable:$true] %s25_s9 }
   0x9   :  { %v10_v1 = vld [vmem:[#allocation3] sm:$0x1]  }
   0xa   :  { %v7_v2 = vld [vmem:[#allocation3] sm:$0x1]   ;;  %11 = vrot.lane.b32.xlu0 %v10_v1, %s62_s0 }
   0xb   :  { %9 = vst.msk [vmem:[#allocation2] sm:$0x1] %vm8_vm0, %v7_v2  }
  0x7c   :  { %v12_v3 = vpop.permute.xlu0 %11  }
  0x7d   :  { %15 = vst.msk [vmem:[#allocation2 + $0x1] sm:$0x1] %vm8_vm0, %v12_v3  }
  0x84   :  { %v18_v4 = vld [vmem:[#allocation2] sm:$0x3] }
  0x85   :  { %21 = vst [vmem:[#allocation0] sm:$0x3] %v18_v4 }
  0x86   :  { %30 = dma.vmem_to_hbm [thread:$0]  %s26_s9, 32, %s28_s1, [#allocation1]  }
  0x87   :  { %60 = dma.done.wait [#allocation1], 32  }
  0x88   :  { %61 = vsyncadd [#allocation1], 4294967264 }
  0x89   :  { %33 = vsyncpa [#allocation1], 1 }

// kernel: action_net_forward.1
= control target key start
LH: loop header
LB: loop body
LE: loop exit
PB: predicated region body
PF: predicated region fallthrough
CT: control target
= control target key end

     0   :  { %vm69_vm0 = vcmask 523264   ;;  %v289_v9 = vmov 0   ;;  %s489_s0 = inlined_call_operand.vmem [shape: f32[128,64], index: 0, kind: input, shape index: {}]   ;;  %s490_s3 = inlined_call_operand.vmem [shape: f32[32,1], index: 3, kind: input, shape index: {}]   ;;  %s491_s4 = inlined_call_operand.vmem [shape: f32[32,1], index: 4, kind: input, shape index: {}]   ;;  %s492_s2 = inlined_call_operand.vmem [shape: f32[32,64], index: 2, kind: input, shape index: {}]   ;;  %s493_s1 = inlined_call_operand.vmem [shape: f32[1,128], index: 1, kind: input, shape index: {}]   ;;  %s494_s5 = inlined_call_operand.<no memory space> [shape: f32[1,1], index: 5, kind: input, shape index: {}]   ;;  %s495_s6 = inlined_call_operand.vmem [shape: f32[1,128], index: 6, kind: output, shape index: {}]  }
   0x1   :  { %v44_v0 = vld [vmem:[%s489_s0 + $0x78] sm:$0xff]  ;;  %v43_v1 = vld [vmem:[%s489_s0 + $0x70] sm:$0xff]  ;;  %v42_v2 = vld [vmem:[%s489_s0 + $0x68] sm:$0xff]  ;;  %285 = vset.pattern.permute.xlu0 %v289_v9  ;;  %286 = vset.pattern.permute.xlu1 %v289_v9 }
   0x2   :  { %216 = vmatpush.xpose.msk.msra.mxu0 %vm69_vm0, %v44_v0  ;;  %236 = vmatpush.xpose.msk.msra.mxu1 %vm69_vm0, %v44_v0  ;;  %v41_v3 = vld [vmem:[%s489_s0 + $0x60] sm:$0xff]  ;;  %v40_v4 = vld [vmem:[%s489_s0 + $0x58] sm:$0xff]  ;;  %v39_v5 = vld [vmem:[%s489_s0 + $0x50] sm:$0xff] }
   0x3   :  { %237 = vmatpush.xpose.msk.msra.mxu2 %vm69_vm0, %v44_v0  ;;  %238 = vmatpush.xpose.msk.msra.mxu3 %vm69_vm0, %v44_v0  ;;  %v38_v6 = vld [vmem:[%s489_s0 + $0x48] sm:$0xff]  ;;  %v45_v7 = vld [vmem:[%s490_s3] sm:$0xff]  ;;  %v47_v8 = vld [vmem:[%s490_s3 + $0x10] sm:$0xff] }
   0x4   :  { %51 = vperm.xlu0 %285, %v45_v7   ;;  %61 = vperm.xlu1 %286, %v47_v8   ;;  %v37_v10 = vld [vmem:[%s489_s0 + $0x40] sm:$0xff]  ;;  %v36_v11 = vld [vmem:[%s489_s0 + $0x38] sm:$0xff]  ;;  %v46_v12 = vld [vmem:[%s490_s3 + $0x8] sm:$0xff] }
   0x5   :  { %287 = vset.pattern.permute.xlu2 %v289_v9  ;;  %v48_v13 = vld [vmem:[%s490_s3 + $0x18] sm:$0xff]  ;;  %v35_v14 = vld [vmem:[%s489_s0 + $0x30] sm:$0xff]  ;;  %v170_v15 = vld [vmem:[%s491_s4] sm:$0xff] }
   0x6   :  { %217 = vmatpush.xpose.msk.msra.mxu0 %vm69_vm0, %v43_v1  ;;  %239 = vmatpush.xpose.msk.msra.mxu1 %vm69_vm0, %v43_v1  ;;  %v172_v16 = vld [vmem:[%s491_s4 + $0x10] sm:$0xff]  ;;  %v34_v17 = vld [vmem:[%s489_s0 + $0x28] sm:$0xff]  ;;  %v173_v18 = vld [vmem:[%s491_s4 + $0x18] sm:$0xff] }
   0x7   :  { %240 = vmatpush.xpose.msk.msra.mxu2 %vm69_vm0, %v43_v1  ;;  %241 = vmatpush.xpose.msk.msra.mxu3 %vm69_vm0, %v43_v1  ;;  %v171_v19 = vld [vmem:[%s491_s4 + $0x8] sm:$0xff]  ;;  %v33_v20 = vld [vmem:[%s489_s0 + $0x20] sm:$0xff]  ;;  %v32_v21 = vld [vmem:[%s489_s0 + $0x18] sm:$0xff] }
   0x8   :  { %176 = vperm.xlu2 %287, %v170_v15   ;;  %v31_v22 = vld [vmem:[%s489_s0 + $0x10] sm:$0xff]  ;;  %v30_v23 = vld [vmem:[%s489_s0 + $0x8] sm:$0xff]  ;;  %v29_v24 = vld [vmem:[%s489_s0] sm:$0xff] }
   0x9   :  { %v25_v25 = vld [vmem:[%s492_s2] sm:$0xff]  ;;  %v26_v26 = vld [vmem:[%s492_s2 + $0x8] sm:$0xff]  ;;  %v27_v27 = vld [vmem:[%s492_s2 + $0x10] sm:$0xff] }
   0xa   :  { %218 = vmatpush.xpose.msk.msra.mxu0 %vm69_vm0, %v42_v2  ;;  %242 = vmatpush.xpose.msk.msra.mxu1 %vm69_vm0, %v42_v2  ;;  %v28_v28 = vld [vmem:[%s492_s2 + $0x18] sm:$0xff]  ;;  %v288_v37 = vld [vmem:[%s493_s1] ss:$0 sm:$0xff] }
   0xb   :  { %243 = vmatpush.xpose.msk.msra.mxu2 %vm69_vm0, %v42_v2  ;;  %244 = vmatpush.xpose.msk.msra.mxu3 %vm69_vm0, %v42_v2  ;;  %v208_v2 = vstv %s494_s5 }
   0xc   :  { %56 = vperm.xlu0 %285, %v46_v12   ;;  %66 = vperm.xlu1 %286, %v48_v13  }
   0xe   :  { %219 = vmatpush.xpose.msk.msra.mxu0 %vm69_vm0, %v41_v3  ;;  %245 = vmatpush.xpose.msk.msra.mxu1 %vm69_vm0, %v41_v3 }
   0xf   :  { %246 = vmatpush.xpose.msk.msra.mxu2 %vm69_vm0, %v41_v3  ;;  %247 = vmatpush.xpose.msk.msra.mxu3 %vm69_vm0, %v41_v3 }
  0x10   :  { %181 = vperm.xlu2 %287, %v171_v19  }
  0x12   :  { %220 = vmatpush.xpose.msk.msra.mxu0 %vm69_vm0, %v40_v4  ;;  %248 = vmatpush.xpose.msk.msra.mxu1 %vm69_vm0, %v40_v4 }
  0x13   :  { %249 = vmatpush.xpose.msk.msra.mxu2 %vm69_vm0, %v40_v4  ;;  %250 = vmatpush.xpose.msk.msra.mxu3 %vm69_vm0, %v40_v4  ;;  %v24_v4 = vld [vmem:[%s493_s1] sm:$0x1] }
  0x14   :  { %186 = vperm.xlu0 %285, %v172_v16   ;;  %191 = vperm.xlu1 %286, %v173_v18  }
  0x16   :  { %221 = vmatpush.xpose.msk.msra.mxu0 %vm69_vm0, %v39_v5  ;;  %251 = vmatpush.xpose.msk.msra.mxu1 %vm69_vm0, %v39_v5 }
  0x17   :  { %252 = vmatpush.xpose.msk.msra.mxu2 %vm69_vm0, %v39_v5  ;;  %253 = vmatpush.xpose.msk.msra.mxu3 %vm69_vm0, %v39_v5 }
  0x1a   :  { %222 = vmatpush.xpose.msk.msra.mxu0 %vm69_vm0, %v38_v6  ;;  %254 = vmatpush.xpose.msk.msra.mxu1 %vm69_vm0, %v38_v6 }
  0x1b   :  { %255 = vmatpush.xpose.msk.msra.mxu2 %vm69_vm0, %v38_v6  ;;  %256 = vmatpush.xpose.msk.msra.mxu3 %vm69_vm0, %v38_v6 }
  0x1e   :  { %223 = vmatpush.xpose.msk.msra.mxu0 %vm69_vm0, %v37_v10  ;;  %257 = vmatpush.xpose.msk.msra.mxu1 %vm69_vm0, %v37_v10 }
  0x1f   :  { %258 = vmatpush.xpose.msk.msra.mxu2 %vm69_vm0, %v37_v10  ;;  %259 = vmatpush.xpose.msk.msra.mxu3 %vm69_vm0, %v37_v10 }
  0x22   :  { %224 = vmatpush.xpose.msk.msra.mxu0 %vm69_vm0, %v36_v11  ;;  %260 = vmatpush.xpose.msk.msra.mxu1 %vm69_vm0, %v36_v11 }
  0x23   :  { %261 = vmatpush.xpose.msk.msra.mxu2 %vm69_vm0, %v36_v11  ;;  %262 = vmatpush.xpose.msk.msra.mxu3 %vm69_vm0, %v36_v11 }
  0x26   :  { %225 = vmatpush.xpose.msk.msra.mxu0 %vm69_vm0, %v35_v14  ;;  %263 = vmatpush.xpose.msk.msra.mxu1 %vm69_vm0, %v35_v14 }
  0x27   :  { %264 = vmatpush.xpose.msk.msra.mxu2 %vm69_vm0, %v35_v14  ;;  %265 = vmatpush.xpose.msk.msra.mxu3 %vm69_vm0, %v35_v14 }
  0x2a   :  { %226 = vmatpush.xpose.msk.msra.mxu0 %vm69_vm0, %v34_v17  ;;  %266 = vmatpush.xpose.msk.msra.mxu1 %vm69_vm0, %v34_v17 }
  0x2b   :  { %267 = vmatpush.xpose.msk.msra.mxu2 %vm69_vm0, %v34_v17  ;;  %268 = vmatpush.xpose.msk.msra.mxu3 %vm69_vm0, %v34_v17 }
  0x2e   :  { %227 = vmatpush.xpose.msk.msra.mxu0 %vm69_vm0, %v33_v20  ;;  %269 = vmatpush.xpose.msk.msra.mxu1 %vm69_vm0, %v33_v20 }
  0x2f   :  { %270 = vmatpush.xpose.msk.msra.mxu2 %vm69_vm0, %v33_v20  ;;  %271 = vmatpush.xpose.msk.msra.mxu3 %vm69_vm0, %v33_v20 }
  0x32   :  { %228 = vmatpush.xpose.msk.msra.mxu0 %vm69_vm0, %v32_v21  ;;  %272 = vmatpush.xpose.msk.msra.mxu1 %vm69_vm0, %v32_v21 }
  0x33   :  { %273 = vmatpush.xpose.msk.msra.mxu2 %vm69_vm0, %v32_v21  ;;  %274 = vmatpush.xpose.msk.msra.mxu3 %vm69_vm0, %v32_v21 }
  0x36   :  { %229 = vmatpush.xpose.msk.msra.mxu0 %vm69_vm0, %v31_v22  ;;  %275 = vmatpush.xpose.msk.msra.mxu1 %vm69_vm0, %v31_v22 }
  0x37   :  { %276 = vmatpush.xpose.msk.msra.mxu2 %vm69_vm0, %v31_v22  ;;  %277 = vmatpush.xpose.msk.msra.mxu3 %vm69_vm0, %v31_v22 }
  0x3a   :  { %230 = vmatpush.xpose.msk.msra.mxu0 %vm69_vm0, %v30_v23  ;;  %278 = vmatpush.xpose.msk.msra.mxu1 %vm69_vm0, %v30_v23 }
  0x3b   :  { %279 = vmatpush.xpose.msk.msra.mxu2 %vm69_vm0, %v30_v23  ;;  %280 = vmatpush.xpose.msk.msra.mxu3 %vm69_vm0, %v30_v23 }
  0x3e   :  { %231 = vmatpush.xpose.msk.msra.mxu0 %vm69_vm0, %v29_v24  ;;  %281 = vmatpush.xpose.msk.msra.mxu1 %vm69_vm0, %v29_v24 }
  0x3f   :  { %282 = vmatpush.xpose.msk.msra.mxu2 %vm69_vm0, %v29_v24  ;;  %283 = vmatpush.xpose.msk.msra.mxu3 %vm69_vm0, %v29_v24 }
  0x41   :  { %232 = vmatmul.msk.f32.vlgmr.msra.gmra.mxu0 %vm69_vm0, %v25_v25  ;;  %233 = vmatmul.msk.f32.vlgmr.msra.gmra.mxu1 %vm69_vm0, %v26_v26 }
  0x42   :  { %234 = vmatmul.msk.f32.vlgmr.msra.gmra.mxu2 %vm69_vm0, %v27_v27  ;;  %235 = vmatmul.msk.f32.vlgmr.msra.gmra.mxu3 %vm69_vm0, %v28_v28 }
  0x62   :  { %v177_v32 = vpop.permute.xlu2 %176 }
  0x6a   :  { %v182_v47 = vpop.permute.xlu2 %181 }
  0x76   :  { %v52_v29 = vpop.permute.xlu0 %51  ;;  %v62_v30 = vpop.permute.xlu1 %61 }
  0x7e   :  { %v57_v31 = vpop.permute.xlu0 %56  ;;  %v67_v40 = vpop.permute.xlu1 %66 }
  0x86   :  { %v187_v54 = vpop.permute.xlu0 %186  ;;  %v192_v57 = vpop.permute.xlu1 %191 }
  0xbe   :  { %v147_v33 = vpop.f32.mrf.mxu0  ;;  %v150_v34 = vpop.f32.mrf.mxu1 }
  0xbf   :  { %v148_v35 = vadd.f32 %v147_v33, %v52_v29  ;;  %v151_v36 = vadd.f32 %v150_v34, %v57_v31 }
  0xc1   :  { %v159_v38 = vmax.f32 %v148_v35, 0.0  ;;  %v160_v39 = vmax.f32 %v151_v36, 0.0 }
  0xc3   :  { %v166_v41 = vmul.f32 %v288_v37, %v159_v38  ;;  %v167_v42 = vmul.f32 %v288_v37, %v160_v39 }
  0xc5   :  { %v153_v43 = vpop.f32.mrf.mxu2  ;;  %v156_v44 = vpop.f32.mrf.mxu3  ;;  %v194_v48 = vmul.f32 %v177_v32, %v166_v41  ;;  %v195_v49 = vmul.f32 %v182_v47, %v167_v42 }
  0xc6   :  { %v154_v45 = vadd.f32 %v153_v43, %v62_v30  ;;  %v157_v46 = vadd.f32 %v156_v44, %v67_v40 }
  0xc7   :  { %v198_v55 = vadd.f32 %v195_v49, %v194_v48 }
  0xc8   :  { %v161_v50 = vmax.f32 %v154_v45, 0.0  ;;  %v162_v51 = vmax.f32 %v157_v46, 0.0 }
  0xca   :  { %v168_v52 = vmul.f32 %v288_v37, %v161_v50  ;;  %v169_v53 = vmul.f32 %v288_v37, %v162_v51 }
  0xcc   :  { %v196_v56 = vmul.f32 %v187_v54, %v168_v52  ;;  %v197_v59 = vmul.f32 %v192_v57, %v169_v53 }
  0xce   :  { %v199_v58 = vadd.f32 %v198_v55, %v196_v56 }
  0xd0   :  { %v200_v60 = vadd.f32 %v199_v58, %v197_v59 }
  0xd2   :  { %v201_v61 = vrot.slane %v200_v60, 4 }
  0xd4   :  { %v202_v62 = vadd.f32 %v201_v61, %v200_v60 }
  0xd6   :  { %v203_v63 = vrot.slane %v202_v62, 2 }
  0xd8   :  { %v204_v0 = vadd.f32 %v203_v63, %v202_v62 }
  0xda   :  { %v205_v1 = vrot.slane %v204_v0, 1 }
  0xdc   :  { %v206_v3 = vadd.f32 %v205_v1, %v204_v0 }
  0xde   :  { %v209_v5 = vadd.f32 %v208_v2, %v206_v3 }
  0xe0   :  { %v210_v6 = vmul.f32 %v209_v5, %v24_v4 }
  0xe2   :  { %211 = vst [vmem:[%s495_s6] sm:$0x1] %v210_v6 }

</bundles_post_ra>
